<compile_context>
chip_gen: v6e
topology: v6e:2x2x1
jax: 0.10.0
libtpu: 0.0.40
codegen_flags: <defaults>
</compile_context>

<pallas_src>
import functools

import jax
import jax.numpy as jnp
from jax.experimental import pallas as pl
from jax.experimental.pallas import tpu as pltpu


def _decoder_kernel(eps, x_in_ref, w_in_ref, w_hid_ref, gb_ref,
                    w_out_ref, b_out_ref, out_ref, x_scr):
    f32 = jnp.float32
    i = pl.program_id(0)
    last = pl.num_programs(0) - 1
    act_dt = x_scr.dtype
    m = x_scr.shape[1]                 # M = B * n_coord on the lane axis
    inv_m = 1.0 / m                    # BN averages over all B*n_coord rows

    # ---- init_dec = linear_img(z) (expanded over coords) + linear_coord(coord)
    # fused as one small-K matmul over the concatenated (z_exp ; coord) slab.
    @pl.when(i == 0)
    def _():
        init = jnp.dot(w_in_ref[...], x_in_ref[...],
                       preferred_element_type=f32)              # (H, M) f32
        x_scr[...] = init.astype(act_dt)

    # ---- hidden layer i: Linear (bias dropped - train-mode BN subtracts the
    # per-feature mean so a constant per-feature shift cancels exactly)
    # -> BatchNorm1d (batch stats) -> tanh.
    w = w_hid_ref[...]                                          # (H, H) compute dtype
    x = x_scr[...]                                              # (H, M) compute dtype
    h = jnp.dot(w, x, preferred_element_type=f32)               # (H, M) f32 acc

    # Single-pass BN stats over the lane (row) axis: XLU reductions.
    s1 = jnp.sum(h, axis=1, keepdims=True)                      # (H, 1)
    s2 = jnp.sum(h * h, axis=1, keepdims=True)                  # (H, 1)
    mean = s1 * inv_m
    # Clamp: E[x^2]-E[x]^2 can go slightly negative in f32 -> NaN in rsqrt.
    var = jnp.maximum(s2 * inv_m - mean * mean, 0.0)

    gb = gb_ref[...]                                            # (H, 2): gamma | beta
    scale = gb[:, 0:1] * jax.lax.rsqrt(var + eps)               # (H, 1)
    shift = gb[:, 1:2] - mean * scale                           # (H, 1)

    y = h * scale + shift                                       # f32 affine (one FMA)
    x_new = jnp.tanh(y.astype(act_dt))                          # bf16 tanh on v6e/v7x
    x_scr[...] = x_new

    # ---- final (H -> 1) projection + sigmoid, only on the last layer step:
    # VPU multiply + sublane reduce, lane-dense (1, M) store.
    @pl.when(i == last)
    def _():
        xf = x_new.astype(f32)
        logit = jnp.sum(xf * w_out_ref[...], axis=0, keepdims=True) + b_out_ref[...]
        out_ref[...] = jax.nn.sigmoid(logit)


def ivvaefcnn_decoder_forward(coord, z, params, *, num_hid, eps=1e-5,
                              compute_dtype=jnp.bfloat16):
    """Forward pass of ivVAEFCNN_decoder (bi_lin=False, train-mode BN).

    compute_dtype: dtype of the hidden-layer MXU operands and of the stored
    activations (tanh output).  bf16 (default) is MXU-native on v5e/v6e/v7x;
    accumulation, BN statistics and the affine stay f32.  Pass jnp.float32
    for bit-level agreement with an f32 reference.
    """
    B, n_coord, n_dim = coord.shape
    z_dim = z.shape[1]
    H = params['w_img'].shape[0]
    M = B * n_coord
    K = z_dim + n_dim
    f32 = jnp.float32

    # ---- layout plumbing only (no compute hoisted out of the kernel) ----
    coord_t = coord.reshape(M, n_dim).T.astype(f32)               # (n_dim, M)
    z_exp = jnp.repeat(z, n_coord, axis=0).T.astype(f32)          # (z_dim, M)
    x_in = jnp.concatenate([z_exp, coord_t], axis=0)              # (K, M)
    w_in = jnp.concatenate([params['w_img'], params['w_coord']],
                           axis=1).astype(f32)                    # (H, K)
    w_hid = params['w_hid'].astype(compute_dtype)                 # (L,H,H) cast once in HBM
    gb = jnp.stack([params['gamma'], params['beta']],
                   axis=-1).astype(f32)                           # (L, H, 2)
    w_out_t = params['w_out'].T.astype(f32)                       # (H, 1)
    b_out = params['b_out'].astype(f32)                           # (1, 1)

    # ---- VMEM budget: derive from footprint, cap below physical VMEM ----
    act_b = jnp.dtype(compute_dtype).itemsize
    est = (H * M * act_b                    # persistent activation scratch
           + 3 * H * M * 4                  # f32 layer temporaries (h, h*h, affine)
           + 2 * 2 * H * H * act_b          # double-buffered per-layer weight tile
           + 2 * H * 128 * 4                # double-buffered (H,2) gamma/beta (lane-padded)
           + 2 * (K * M + H * K + M + H) * 4)
    try:
        phys = pltpu.get_tpu_info().vmem_capacity_bytes   # 64 MiB/TC on v7x, 128 MiB v5e/v6e
    except Exception:
        phys = 64 * 1024 * 1024
    vmem_limit = int(min(max(est * 3 // 2, 32 * 1024 * 1024), phys * 4 // 5))

    grid_spec = pltpu.PrefetchScalarGridSpec(
        num_scalar_prefetch=0,
        grid=(num_hid,),
        in_specs=[
            pl.BlockSpec((K, M), lambda i: (0, 0)),               # x_in (resident)
            pl.BlockSpec((H, K), lambda i: (0, 0)),               # w_in (resident)
            pl.BlockSpec((None, H, H), lambda i: (i, 0, 0)),      # per-layer weight
            pl.BlockSpec((None, H, 2), lambda i: (i, 0, 0)),      # per-layer gamma|beta
            pl.BlockSpec((H, 1), lambda i: (0, 0)),               # w_out
            pl.BlockSpec((1, 1), lambda i: (0, 0)),               # b_out
        ],
        out_specs=pl.BlockSpec((1, M), lambda i: (0, 0)),
        scratch_shapes=[pltpu.VMEM((H, M), compute_dtype)],       # persistent activations
    )

    out_flat = pl.pallas_call(
        functools.partial(_decoder_kernel, eps),
        out_shape=jax.ShapeDtypeStruct((1, M), f32),
        grid_spec=grid_spec,
        compiler_params=pltpu.CompilerParams(
            dimension_semantics=("arbitrary",),   # scratch carries across layer steps
            vmem_limit_bytes=vmem_limit),
    )(x_in, w_in, w_hid, gb, w_out_t, b_out)

    return out_flat.reshape(B, n_coord)


def init_params(key, n_dim, z_dim, hid_dim, num_hid):
    ks = jax.random.split(key, 6)

    def unif(k, shape, fan_in):
        bound = 1.0 / (fan_in ** 0.5)
        return jax.random.uniform(k, shape, jnp.float32, -bound, bound)

    return dict(
        # PyTorch nn.Linear layout: weight is (out_features, in_features).
        w_coord=unif(ks[0], (hid_dim, n_dim), n_dim),
        w_img=unif(ks[1], (hid_dim, z_dim), z_dim),
        w_hid=unif(ks[2], (num_hid, hid_dim, hid_dim), hid_dim),
        b_hid=unif(ks[3], (num_hid, hid_dim), hid_dim),   # kept for API parity (BN cancels it)
        gamma=jnp.ones((num_hid, hid_dim), jnp.float32),  # BN default init
        beta=jnp.zeros((num_hid, hid_dim), jnp.float32),
        w_out=unif(ks[4], (1, hid_dim), hid_dim),
        b_out=unif(ks[5], (1, 1), hid_dim),
    )


def reference_forward(coord, z, params, *, num_hid, eps=1e-5):
    # Pure-JAX replica of the PyTorch forward (train-mode BatchNorm),
    # including the hidden-layer bias (which BN cancels mathematically).
    B, Nc, n_dim = coord.shape
    img_tmp = z @ params['w_img'].T                              # (B, H)
    coord_tmp = coord.reshape(B * Nc, n_dim) @ params['w_coord'].T
    x = coord_tmp.reshape(B, Nc, -1) + img_tmp[:, None, :]
    x = x.reshape(B * Nc, -1)
    for i in range(num_hid):
        h = x @ params['w_hid'][i].T + params['b_hid'][i]
        mean = h.mean(0)
        var = ((h - mean) ** 2).mean(0)
        h = (h - mean) / jnp.sqrt(var + eps)
        h = h * params['gamma'][i] + params['beta'][i]
        x = jnp.tanh(h)
    out = jax.nn.sigmoid(x @ params['w_out'].T + params['b_out'][0])
    return out.reshape(B, Nc)


if __name__ == "__main__":
    # Small shapes consistent with the module's forward.
    B, n_coord, n_dim, z_dim, hid_dim, num_hid = 2, 64, 2, 8, 32, 2

    key = jax.random.PRNGKey(0)
    k_coord, k_z, k_params = jax.random.split(key, 3)

    coord = jax.random.normal(k_coord, (B, n_coord, n_dim), jnp.float32)
    z = jax.random.normal(k_z, (B, z_dim), jnp.float32)
    params = init_params(k_params, n_dim, z_dim, hid_dim, num_hid)

    ref = reference_forward(coord, z, params, num_hid=num_hid)

    # Default fast path: bf16 MXU operands / bf16 tanh, f32 accumulation + BN.
    out_bf16 = jax.block_until_ready(
        ivvaefcnn_decoder_forward(coord, z, params, num_hid=num_hid))
    assert out_bf16.shape == (B, n_coord)
    err_bf16 = float(jnp.max(jnp.abs(out_bf16 - ref)))
    assert err_bf16 < 5e-2, f"bf16 path max abs err {err_bf16}"

    # Strict f32 path: tight agreement with the f32 reference.
    out_f32 = jax.block_until_ready(
        ivvaefcnn_decoder_forward(coord, z, params, num_hid=num_hid,
                                  compute_dtype=jnp.float32))
    err_f32 = float(jnp.max(jnp.abs(out_f32 - ref)))
    assert err_f32 < 2e-4, f"f32 path max abs err {err_f32}"

    print("KERNEL_OK")
</pallas_src>

<mosaic_0001>
module attributes {stable_mosaic.version = 11 : i64} {
  func.func @_decoder_kernel(%arg0: i32, %arg1: memref<10x128xf32, #tpu.memory_space<vmem>>, %arg2: memref<32x10xf32, #tpu.memory_space<vmem>>, %arg3: memref<1x32x32xbf16, #tpu.memory_space<vmem>>, %arg4: memref<1x32x2xf32, #tpu.memory_space<vmem>>, %arg5: memref<32x1xf32, #tpu.memory_space<vmem>>, %arg6: memref<1x1xf32, #tpu.memory_space<vmem>>, %arg7: memref<1x128xf32, #tpu.memory_space<vmem>>, %arg8: memref<32x128xbf16, #tpu.memory_space<vmem>>) attributes {dimension_semantics = [#tpu.dimension_semantics<arbitrary>], iteration_bounds = array<i64: 2>, scalar_prefetch = 0 : i64, scratch_operands = 1 : i64, tpu.core_type = #tpu.core_type<tc>, window_params = [{pipeline_mode = #tpu.pipeline_mode<synchronous>, transform_indices = @transform_0, window_bounds = array<i64: 10, 128>}, {pipeline_mode = #tpu.pipeline_mode<synchronous>, transform_indices = @transform_1, window_bounds = array<i64: 32, 10>}, {transform_indices = @transform_2, window_bounds = array<i64: 1, 32, 32>}, {transform_indices = @transform_3, window_bounds = array<i64: 1, 32, 2>}, {pipeline_mode = #tpu.pipeline_mode<synchronous>, transform_indices = @transform_4, window_bounds = array<i64: 32, 1>}, {pipeline_mode = #tpu.pipeline_mode<synchronous>, transform_indices = @transform_5, window_bounds = array<i64: 1, 1>}, {pipeline_mode = #tpu.pipeline_mode<synchronous>, transform_indices = @transform_6, window_bounds = array<i64: 1, 128>}]} {
    %c0_i32 = arith.constant 0 : i32
    %0 = arith.cmpi eq, %arg0, %c0_i32 : i32
    %1 = arith.extui %0 : i1 to i32
    %c0_i32_0 = arith.constant 0 : i32
    %2 = arith.cmpi ne, %1, %c0_i32_0 : i32
    scf.if %2 {
      %c0_17 = arith.constant 0 : index
      %c0_18 = arith.constant 0 : index
      %40 = vector.load %arg2[%c0_17, %c0_18] : memref<32x10xf32, #tpu.memory_space<vmem>>, vector<32x10xf32>
      %c0_19 = arith.constant 0 : index
      %c0_20 = arith.constant 0 : index
      %41 = vector.load %arg1[%c0_19, %c0_20] : memref<10x128xf32, #tpu.memory_space<vmem>>, vector<10x128xf32>
      %cst_21 = arith.constant dense<0.000000e+00> : vector<32x128xf32>
      %42 = tpu.matmul %40, %41, %cst_21 {dimension_numbers = #tpu.dot_dimension_numbers<[1], [0], [0], [1], [0, 0, 1, 1], [], []>} : vector<32x10xf32>, vector<10x128xf32>, vector<32x128xf32> -> vector<32x128xf32>
      %43 = arith.truncf %42 : vector<32x128xf32> to vector<32x128xbf16>
      %c0_22 = arith.constant 0 : index
      %c0_23 = arith.constant 0 : index
      %44 = vector.load %arg8[%c0_22, %c0_23] : memref<32x128xbf16, #tpu.memory_space<vmem>>, vector<32x128xbf16>
      tpu.vector_store %arg8[%c0_22, %c0_23], %43 {strides = array<i32>} : memref<32x128xbf16, #tpu.memory_space<vmem>>, vector<32x128xbf16>,
    } else {
    }
    %c0 = arith.constant 0 : index
    %c0_1 = arith.constant 0 : index
    %c0_2 = arith.constant 0 : index
    %3 = vector.load %arg3[%c0, %c0_1, %c0_2] : memref<1x32x32xbf16, #tpu.memory_space<vmem>>, vector<1x32x32xbf16>
    %4 = vector.shape_cast %3 : vector<1x32x32xbf16> to vector<32x32xbf16>
    %c0_3 = arith.constant 0 : index
    %c0_4 = arith.constant 0 : index
    %5 = vector.load %arg8[%c0_3, %c0_4] : memref<32x128xbf16, #tpu.memory_space<vmem>>, vector<32x128xbf16>
    %cst = arith.constant dense<0.000000e+00> : vector<32x128xf32>
    %6 = tpu.matmul %4, %5, %cst {dimension_numbers = #tpu.dot_dimension_numbers<[1], [0], [0], [1], [0, 0, 1, 1], [], []>} : vector<32x32xbf16>, vector<32x128xbf16>, vector<32x128xf32> -> vector<32x128xf32>
    %cst_5 = arith.constant dense<0.000000e+00> : vector<32xf32>
    %7 = vector.multi_reduction <add>, %6, %cst_5 [1] : vector<32x128xf32> to vector<32xf32>
    %8 = vector.shape_cast %7 : vector<32xf32> to vector<32x1xf32>
    %9 = arith.mulf %6, %6 : vector<32x128xf32>
    %cst_6 = arith.constant dense<0.000000e+00> : vector<32xf32>
    %10 = vector.multi_reduction <add>, %9, %cst_6 [1] : vector<32x128xf32> to vector<32xf32>
    %11 = vector.shape_cast %10 : vector<32xf32> to vector<32x1xf32>
    %cst_7 = arith.constant 7.812500e-03 : f32
    %12 = vector.broadcast %cst_7 : f32 to vector<32x1xf32>
    %13 = arith.mulf %8, %12 : vector<32x1xf32>
    %cst_8 = arith.constant 7.812500e-03 : f32
    %14 = vector.broadcast %cst_8 : f32 to vector<32x1xf32>
    %15 = arith.mulf %11, %14 : vector<32x1xf32>
    %16 = arith.mulf %13, %13 : vector<32x1xf32>
    %17 = arith.subf %15, %16 : vector<32x1xf32>
    %cst_9 = arith.constant 0.000000e+00 : f32
    %18 = vector.broadcast %cst_9 : f32 to vector<32x1xf32>
    %19 = arith.maximumf %17, %18 : vector<32x1xf32>
    %c0_10 = arith.constant 0 : index
    %c0_11 = arith.constant 0 : index
    %c0_12 = arith.constant 0 : index
    %20 = vector.load %arg4[%c0_10, %c0_11, %c0_12] : memref<1x32x2xf32, #tpu.memory_space<vmem>>, vector<1x32x2xf32>
    %21 = vector.shape_cast %20 : vector<1x32x2xf32> to vector<32x2xf32>
    %22 = vector.extract_strided_slice %21 {offsets = [0, 0], sizes = [32, 1], strides = [1, 1]} : vector<32x2xf32> to vector<32x1xf32>
    %cst_13 = arith.constant 9.99999974E-6 : f32
    %23 = vector.broadcast %cst_13 : f32 to vector<32x1xf32>
    %24 = arith.addf %19, %23 : vector<32x1xf32>
    %25 = math.rsqrt %24 : vector<32x1xf32>
    %26 = arith.mulf %22, %25 : vector<32x1xf32>
    %27 = vector.extract_strided_slice %21 {offsets = [0, 1], sizes = [32, 1], strides = [1, 1]} : vector<32x2xf32> to vector<32x1xf32>
    %28 = arith.mulf %13, %26 : vector<32x1xf32>
    %29 = arith.subf %27, %28 : vector<32x1xf32>
    %30 = vector.broadcast %26 : vector<32x1xf32> to vector<32x128xf32>
    %31 = arith.mulf %6, %30 : vector<32x128xf32>
    %32 = vector.broadcast %29 : vector<32x1xf32> to vector<32x128xf32>
    %33 = arith.addf %31, %32 : vector<32x128xf32>
    %34 = arith.truncf %33 : vector<32x128xf32> to vector<32x128xbf16>
    %35 = math.tanh %34 : vector<32x128xbf16>
    %c0_14 = arith.constant 0 : index
    %c0_15 = arith.constant 0 : index
    %36 = vector.load %arg8[%c0_14, %c0_15] : memref<32x128xbf16, #tpu.memory_space<vmem>>, vector<32x128xbf16>
    tpu.vector_store %arg8[%c0_14, %c0_15], %35 {strides = array<i32>} : memref<32x128xbf16, #tpu.memory_space<vmem>>, vector<32x128xbf16>,
    %c1_i32 = arith.constant 1 : i32
    %37 = arith.cmpi eq, %arg0, %c1_i32 : i32
    %38 = arith.extui %37 : i1 to i32
    %c0_i32_16 = arith.constant 0 : i32
    %39 = arith.cmpi ne, %38, %c0_i32_16 : i32
    scf.if %39 {
      %40 = arith.extf %35 : vector<32x128xbf16> to vector<32x128xf32>
      %c0_17 = arith.constant 0 : index
      %c0_18 = arith.constant 0 : index
      %41 = vector.load %arg5[%c0_17, %c0_18] : memref<32x1xf32, #tpu.memory_space<vmem>>, vector<32x1xf32>
      %42 = vector.broadcast %41 : vector<32x1xf32> to vector<32x128xf32>
      %43 = arith.mulf %40, %42 : vector<32x128xf32>
      %cst_19 = arith.constant dense<0.000000e+00> : vector<128xf32>
      %44 = vector.multi_reduction <add>, %43, %cst_19 [0] : vector<32x128xf32> to vector<128xf32>
      %45 = vector.shape_cast %44 : vector<128xf32> to vector<1x128xf32>
      %c0_20 = arith.constant 0 : index
      %c0_21 = arith.constant 0 : index
      %46 = vector.load %arg6[%c0_20, %c0_21] : memref<1x1xf32, #tpu.memory_space<vmem>>, vector<1x1xf32>
      %47 = vector.broadcast %46 : vector<1x1xf32> to vector<1x128xf32>
      %48 = arith.addf %45, %47 : vector<1x128xf32>
      %49 = arith.negf %48 : vector<1x128xf32>
      %50 = math.exp %49 : vector<1x128xf32>
      %cst_22 = arith.constant 1.000000e+00 : f32
      %51 = vector.broadcast %cst_22 : f32 to vector<1x128xf32>
      %52 = arith.addf %51, %50 : vector<1x128xf32>
      %53 = arith.divf %51, %52 : vector<1x128xf32>
      %c0_23 = arith.constant 0 : index
      %c0_24 = arith.constant 0 : index
      %54 = vector.load %arg7[%c0_23, %c0_24] : memref<1x128xf32, #tpu.memory_space<vmem>>, vector<1x128xf32>
      tpu.vector_store %arg7[%c0_23, %c0_24], %53 {strides = array<i32>} : memref<1x128xf32, #tpu.memory_space<vmem>>, vector<1x128xf32>,
    } else {
    }
    return
  }
  func.func @transform_0(%arg0: i32) -> (i32, i32) {
    %c0_i32 = arith.constant 0 : i32
    %c0_i32_0 = arith.constant 0 : i32
    %c0_i32_1 = arith.constant 0 : i32
    return %c0_i32, %c0_i32_0 : i32, i32
  }
  func.func @transform_1(%arg0: i32) -> (i32, i32) {
    %c0_i32 = arith.constant 0 : i32
    %c0_i32_0 = arith.constant 0 : i32
    %c0_i32_1 = arith.constant 0 : i32
    return %c0_i32, %c0_i32_0 : i32, i32
  }
  func.func @transform_2(%arg0: i32) -> (i32, i32, i32) {
    %c0_i32 = arith.constant 0 : i32
    %c0_i32_0 = arith.constant 0 : i32
    %c0_i32_1 = arith.constant 0 : i32
    return %arg0, %c0_i32, %c0_i32_0 : i32, i32, i32
  }
  func.func @transform_3(%arg0: i32) -> (i32, i32, i32) {
    %c0_i32 = arith.constant 0 : i32
    %c0_i32_0 = arith.constant 0 : i32
    %c0_i32_1 = arith.constant 0 : i32
    return %arg0, %c0_i32, %c0_i32_0 : i32, i32, i32
  }
  func.func @transform_4(%arg0: i32) -> (i32, i32) {
    %c0_i32 = arith.constant 0 : i32
    %c0_i32_0 = arith.constant 0 : i32
    %c0_i32_1 = arith.constant 0 : i32
    return %c0_i32, %c0_i32_0 : i32, i32
  }
  func.func @transform_5(%arg0: i32) -> (i32, i32) {
    %c0_i32 = arith.constant 0 : i32
    %c0_i32_0 = arith.constant 0 : i32
    %c0_i32_1 = arith.constant 0 : i32
    return %c0_i32, %c0_i32_0 : i32, i32
  }
  func.func @transform_6(%arg0: i32) -> (i32, i32) {
    %c0_i32 = arith.constant 0 : i32
    %c0_i32_0 = arith.constant 0 : i32
    %c0_i32_1 = arith.constant 0 : i32
    return %c0_i32, %c0_i32_0 : i32, i32
  }
}

</mosaic_0001>

<bundles_post_ra>
// kernel: tpu_custom_call.1
= control target key start
LH: loop header
LB: loop body
LE: loop exit
PB: predicated region body
PF: predicated region fallthrough
CT: control target
= control target key end

     0   :  { %s1056_s0 = inlined_call_operand.vmem [shape: f32[10,128], index: 0, kind: input, shape index: {}]   ;;  %s1057_s1 = inlined_call_operand.vmem [shape: f32[32,10], index: 1, kind: input, shape index: {}]   ;;  %s1058_s2 = inlined_call_operand.vmem [shape: bf16[2,32,32], index: 2, kind: input, shape index: {}]   ;;  %s1059_s3 = inlined_call_operand.vmem [shape: f32[2,32,2], index: 3, kind: input, shape index: {}]   ;;  %s1060_s4 = inlined_call_operand.vmem [shape: f32[32,1], index: 4, kind: input, shape index: {}]   ;;  %s1061_s5 = inlined_call_operand.<no memory space> [shape: f32[1,1], index: 5, kind: input, shape index: {}]   ;;  %s1062_s6 = inlined_call_operand.hbm [shape: f32[1,128], index: 6, kind: output, shape index: {}]  }
   0x1   :  { %v11_v0 = vstv %s1061_s5 }
   0x2   :  { %12 = vst [vmem:[#allocation3] sm:$0x1] %v11_v0 }
   0x3   :  { %13 = vsyncpa [#allocation5], 0  ;;  %s957_s23 = smov 0  }
   0x4 LB: > { %s963_s24 = sadd.s32 4294967295, %s912_s23   ;;  %p753_p0 = scmp.ge.s32.totalorder %s912_s23, 1  ;;  %s912_s23 = sphi %s957_s23, %s19_s23  }
   0x5   : > { %p220_p1 = scmp.lt.s32.totalorder %s912_s23, 3 }
   0x7   : > { %p221_p2 = pnand %p753_p0, %p220_p1 }
   0x8   : > { %p250_p3 = scmp.lt.s32.totalorder (!%p221_p2), %s963_s24, 1  ;;  %p758_p4 = scmp.ne.s32.totalorder (!%p221_p2), %s963_s24, 0 }
   0x9   : > { %224 = sbr.rel (%p221_p2) target bundleno = 1081 (0x439), region = 44 }
   0xe   : > { %s251_s5 = scalar_select %p250_p3, %s963_s24, 1 }
   0xf   : > { %264 = sbr.rel (%p758_p4) target bundleno = 224 (0xe0), region = 48 }
  0x10   : > { %s784_s25 = sshll.u32 %s251_s5, 4  ;;  %s785_s26 = sshll.u32 %s251_s5, 5 }
  0x11   : > { %s972_s29 = scalar_lea.vmem %s1058_s2, %s784_s25  ;;  %s977_s8 = scalar_lea.vmem %s1059_s3, %s785_s26 }
  0x14   : > { %v270_v1 = vld [vmem:[%s1056_s0 + $0x8] sm:$0x3]  ;;  %vm284_vm0 = vcmask 1041408   ;;  %v269_v2 = vld [vmem:[%s1056_s0] sm:$0xff]  ;;  %vm271_vm1 = vcmask 80896   ;;  %v267_v4 = vld [vmem:[%s1057_s1 + $0x10] sm:$0xff] }
  0x15   : > { %811 = vmatprep.subr.msk.mxu0 %vm284_vm0, %v270_v1  ;;  %829 = vmatprep.subr.msk.mxu1 %vm284_vm0, %v270_v1  ;;  %v265_v3 = vld [vmem:[%s1057_s1] sm:$0xff]  ;;  %v266_v5 = vld [vmem:[%s1057_s1 + $0x8] sm:$0xff]  ;;  %v268_v6 = vld [vmem:[%s1057_s1 + $0x18] sm:$0xff] }
  0x16   : > { %812 = vmatpush3.msk.msra.mxu0 %vm284_vm0, %v270_v1  ;;  %831 = vmatpush3.msk.msra.mxu1 %vm284_vm0, %v270_v1 }
  0x17   : > { %813 = vmatprep.subr.mxu0 %v269_v2  ;;  %830 = vmatprep.subr.mxu1 %v269_v2 }
  0x18   : > { %814 = vmatpush3.msra.mxu0 %v269_v2  ;;  %832 = vmatpush3.msra.mxu1 %v269_v2 }
  0x19   : > { %815 = vmatprep.mubr.msk.f32.mxu0 %vm271_vm1, %v265_v3  ;;  %818 = vmatprep.mubr.msk.f32.mxu1 %vm271_vm1, %v267_v4 }
  0x1a   : > { %816 = vmatmul.mubr.msk.f32.vlgmr.msra.gmra.mxu0 %vm271_vm1, %v266_v5  ;;  %819 = vmatmul.mubr.msk.f32.vlgmr.msra.gmra.mxu1 %vm271_vm1, %v268_v6 }
  0xda   : > { %v817_v7 = vpop.f32.mrf.mxu0  ;;  %v820_v8 = vpop.f32.mrf.mxu1 }
  0xdc   : > { %v354_v9 = vpop.f32.mrf.mxu0  ;;  %v364_v10 = vpop.f32.mrf.mxu1 }
  0xdd   : > { %v793_v11 = vpack.c.bf16 %v817_v7, %v354_v9  ;;  %v798_v12 = vpack.c.bf16 %v820_v8, %v364_v10 }
  0xdf   : > { %794 = vst [vmem:[#allocation2] sm:$0xff] %v793_v11   ;;  %800 = vst [vmem:[#allocation2 + $0x8] sm:$0xff] %v798_v12  }
  0xe0 PF: > { %vm423_vm2 = vcmask 261120   ;;  %v858_v15 = vld [vmem:[%s972_s29] sm:$0xff]   ;;  %v859_v16 = vld [vmem:[%s972_s29 + $0x8] sm:$0xff]   ;;  %v914_v25 = vmov 0   ;;  %s915_s21 = smov 1   ;;  %v521_v63 = vld [vmem:[%s977_s8 + $0x10] sm:$0xff] }
  0xe1   : > { %825 = vmatprep.mubr.msk.bf16.mxu0 %vm423_vm2, %v858_v15  ;;  %852 = vset.pattern.permute.xlu0 %v914_v25  ;;  %v519_v58 = vld [vmem:[%s977_s8] sm:$0xff]  ;;  %v520_v2 = vld [vmem:[%s977_s8 + $0x8] sm:$0xff]  ;;  %v522_v3 = vld [vmem:[%s977_s8 + $0x18] sm:$0xff]  ;;  %v916_v9 = vmov 1   ;;  %p778_p5 = scmp.ne.s32.totalorder %s963_s24, 1 }
  0xe2   : > { %853 = vset.pattern.permute.xlu1 %v914_v25 }
  0xe6   : > { %v856_v13 = vld [vmem:[#allocation2 + $0x8] sm:$0xff]   ;;  %v857_v14 = vld [vmem:[#allocation2] sm:$0xff]  }
  0xe7   : > { %821 = vmatprep.subr.bf16.mxu0 %v856_v13 }
  0xe8   : > { %822 = vmatpush3.bf16.msra.mxu0 %v856_v13 }
  0xe9   : > { %823 = vmatprep.subr.bf16.mxu0 %v857_v14 }
  0xec   : > { %824 = vmatpush3.bf16.msra.mxu0 %v857_v14 }
  0xef   : > { %826 = vmatmul.mubr.msk.bf16.vlgmr.msra.gmra.mxu0 %vm423_vm2, %v859_v16 }
 0x1af   : > { %v1000_v17 = vpop.f32.mrf.mxu0 }
 0x1b0   : > { %483 = vadd.xlane.f32.xlu1 %v1000_v17  ;;  %v489_v24 = vmul.f32 %v1000_v17, %v1000_v17 }
 0x1b1   : > { %v1003_v18 = vpop.f32.mrf.mxu0 }
 0x1b2   : > { %479 = vadd.xlane.f32.xlu0 %v1003_v18  ;;  %v487_v20 = vmul.f32 %v1003_v18, %v1003_v18 }
 0x1b3   : > { %v1006_v19 = vpop.f32.mrf.mxu0 }
 0x1b4   : > { %485 = vadd.xlane.f32.xlu1 %v1006_v19  ;;  %v490_v23 = vmul.f32 %v1006_v19, %v1006_v19 }
 0x1b5   : > { %v1011_v21 = vpop.f32.mrf.mxu0 }
 0x1b6   : > { %491 = vadd.xlane.f32.xlu0 %v487_v20  ;;  %v488_v22 = vmul.f32 %v1011_v21, %v1011_v21 }
 0x1b8   : > { %493 = vadd.xlane.f32.xlu1 %v488_v22 }
 0x1ba   : > { %481 = vadd.xlane.f32.xlu0 %v1011_v21 }
 0x1bc   : > { %497 = vadd.xlane.f32.xlu1 %v490_v23 }
 0x1be   : > { %495 = vadd.xlane.f32.xlu0 %v489_v24 }
 0x239   : > { %v484_v26 = vpop.xlane.xlu1 %483 }
 0x23a   : > { %v501_v36 = vmul.f32 0.0078125, %v484_v26 }
 0x23b   : > { %v480_v27 = vpop.xlane.xlu0 %479 }
 0x23c   : > { %v499_v28 = vmul.f32 0.0078125, %v480_v27  ;;  %v509_v46 = vmul.f32 %v501_v36, %v501_v36 }
 0x23d   : > { %v486_v29 = vpop.xlane.xlu1 %485 }
 0x23e   : > { %v507_v31 = vmul.f32 %v499_v28, %v499_v28  ;;  %v502_v33 = vmul.f32 0.0078125, %v486_v29 }
 0x23f   : > { %v492_v30 = vpop.xlane.xlu0 %491 }
 0x240   : > { %v503_v32 = vmul.f32 0.0078125, %v492_v30  ;;  %v510_v40 = vmul.f32 %v502_v33, %v502_v33 }
 0x241   : > { %v494_v34 = vpop.xlane.xlu1 %493 }
 0x242   : > { %v511_v35 = vsub.f32 %v503_v32, %v507_v31  ;;  %v504_v43 = vmul.f32 0.0078125, %v494_v34 }
 0x243   : > { %v482_v37 = vpop.xlane.xlu0 %481 }
 0x244   : > { %v515_v38 = vmax.f32 %v511_v35, 0.0  ;;  %v500_v39 = vmul.f32 0.0078125, %v482_v37 }
 0x245   : > { %v498_v41 = vpop.xlane.xlu1 %497 }
 0x246   : > { %v523_v42 = vadd.f32 1e-05, %v515_v38  ;;  %v508_v44 = vmul.f32 %v500_v39, %v500_v39  ;;  %v506_v45 = vmul.f32 0.0078125, %v498_v41 }
 0x247   : > { %v496_v47 = vpop.xlane.xlu0 %495 }
 0x248   : > { %860 = vrsqrt.f32 %v523_v42  ;;  %v512_v48 = vsub.f32 %v504_v43, %v508_v44  ;;  %v514_v49 = vsub.f32 %v506_v45, %v510_v40  ;;  %v505_v50 = vmul.f32 0.0078125, %v496_v47 }
 0x24a   : > { %v516_v51 = vmax.f32 %v512_v48, 0.0  ;;  %v518_v52 = vmax.f32 %v514_v49, 0.0  ;;  %v513_v53 = vsub.f32 %v505_v50, %v509_v46 }
 0x24c   : > { %v524_v54 = vadd.f32 1e-05, %v516_v51  ;;  %v526_v55 = vadd.f32 1e-05, %v518_v52  ;;  %v517_v56 = vmax.f32 %v513_v53, 0.0 }
 0x24e   : > { %862 = vrsqrt.f32 %v524_v54  ;;  %v525_v57 = vadd.f32 1e-05, %v517_v56 }
 0x24f   : > { %864 = vrsqrt.f32 %v526_v55 }
 0x250   : > { %866 = vrsqrt.f32 %v525_v57 }
 0x255   : > { %v861_v59 = vpop.eup %860 }
 0x256   : > { %v531_v60 = vmul.f32 %v861_v59, %v519_v58 }
 0x258   : > { %v535_v61 = vmul.f32 %v531_v60, %v499_v28 }
 0x25a   : > { %543 = vrot.lane.b32.xlu0 %v535_v61, %s915_s21 }
 0x25b   : > { %v863_v62 = vpop.eup %862 }
 0x25c   : > { %v865_v0 = vpop.eup %864  ;;  %v532_v5 = vmul.f32 %v863_v62, %v520_v2 }
 0x25d   : > { %v867_v1 = vpop.eup %866  ;;  %v534_v7 = vmul.f32 %v865_v0, %v522_v3 }
 0x25e   : > { %561 = vperm.xlu0 %852, %v531_v60   ;;  %v533_v4 = vmul.f32 %v867_v1, %v521_v63  ;;  %v536_v8 = vmul.f32 %v532_v5, %v500_v39 }
 0x25f   : > { %v538_v10 = vmul.f32 %v534_v7, %v502_v33 }
 0x260   : > { %v537_v6 = vmul.f32 %v533_v4, %v501_v36 }
 0x262   : > { %547 = vrot.lane.b32.xlu1 %v537_v6, %s915_s21  ;;  %576 = vperm.xlu0 %852, %v534_v7  }
 0x266   : > { %545 = vrot.lane.b32.xlu1 %v536_v8, %s915_s21  ;;  %855 = vset.pattern.permute.xlu0 %v916_v9 }
 0x26a   : > { %549 = vrot.lane.b32.xlu1 %v538_v10, %s915_s21 }
 0x26e   : > { %566 = vperm.xlu1 %853, %v532_v5  }
 0x272   : > { %571 = vperm.xlu1 %853, %v533_v4  }
 0x276   : > { %854 = vset.pattern.permute.xlu1 %v916_v9 }
 0x2cc   : > { %v544_v11 = vpop.permute.xlu0 %543 }
 0x2cd   : > { %v555_v12 = vsub.f32 %v519_v58, %v544_v11 }
 0x2cf   : > { %585 = vperm.xlu1 %854, %v555_v12  }
 0x2d4   : > { %v548_v13 = vpop.permute.xlu1 %547 }
 0x2d5   : > { %v557_v14 = vsub.f32 %v521_v63, %v548_v13 }
 0x2d7   : > { %595 = vperm.xlu1 %854, %v557_v14  }
 0x2d8   : > { %v546_v15 = vpop.permute.xlu1 %545 }
 0x2d9   : > { %v556_v16 = vsub.f32 %v520_v2, %v546_v15  ;;  %v562_v24 = vpop.permute.xlu0 %561 }
 0x2da   : > { %v579_v28 = vmul.f32 %v562_v24, %v1003_v18 }
 0x2db   : > { %590 = vperm.xlu0 %855, %v556_v16  }
 0x2dc   : > { %v550_v20 = vpop.permute.xlu1 %549 }
 0x2dd   : > { %v558_v22 = vsub.f32 %v522_v3, %v550_v20  ;;  %v577_v26 = vpop.permute.xlu0 %576 }
 0x2de   : > { %v582_v34 = vmul.f32 %v1006_v19, %v577_v26 }
 0x2df   : > { %600 = vperm.xlu1 %854, %v558_v22  }
 0x2e9   : > { %v567_v23 = vpop.permute.xlu1 %566 }
 0x2ea   : > { %v580_v29 = vmul.f32 %v567_v23, %v1011_v21 }
 0x2ed   : > { %v572_v25 = vpop.permute.xlu1 %571 }
 0x2ee   : > { %v581_v35 = vmul.f32 %v1000_v17, %v572_v25 }
 0x34a   : > { %v586_v27 = vpop.permute.xlu1 %585 }
 0x34b   : > { %v603_v32 = vadd.f32 %v586_v27, %v579_v28 }
 0x352   : > { %v596_v30 = vpop.permute.xlu1 %595 }
 0x353   : > { %v605_v38 = vadd.f32 %v596_v30, %v581_v35 }
 0x356   : > { %v591_v31 = vpop.permute.xlu0 %590 }
 0x357   : > { %v604_v33 = vadd.f32 %v591_v31, %v580_v29 }
 0x359   : > { %v607_v36 = vpack.c.bf16 %v604_v33, %v603_v32 }
 0x35a   : > { %v601_v37 = vpop.permute.xlu1 %600 }
 0x35b   : > { %868 = vtanh.bf16 %v607_v36  ;;  %v606_v39 = vadd.f32 %v601_v37, %v582_v34 }
 0x35d   : > { %v608_v40 = vpack.c.bf16 %v606_v39, %v605_v38 }
 0x35f   : > { %870 = vtanh.bf16 %v608_v40 }
 0x369   : > { %v869_v41 = vpop.eup %868 }
 0x36a   : > { %v774_v42 = vcombine.low %v869_v41, %v869_v41  ;;  %v775_v18 = vcombine.high %v869_v41, %v869_v41 }
 0x36c   : > { %625 = vst [vmem:[#allocation2] sm:$0xf] %v774_v42  ;;  %626 = vst [vmem:[#allocation2 + $0x4] sm:$0xf] %v775_v18  ;;  %632 = sbr.rel (%p778_p5) target bundleno = 1066 (0x42a), region = 52 }
 0x36d   : > { %v871_v21 = vpop.eup %870 }
 0x36e   : > { %v776_v43 = vcombine.low %v871_v21, %v871_v21  ;;  %v777_v44 = vcombine.high %v871_v21, %v871_v21 }
 0x370   : > { %627 = vst [vmem:[#allocation2 + $0x8] sm:$0xf] %v776_v43  ;;  %628 = vst [vmem:[#allocation2 + $0xc] sm:$0xf] %v777_v44 }
 0x371   : > { %v639_v17 = vld [vmem:[%s1060_s4 + $0x10] sm:$0xff]  ;;  %v637_v19 = vld [vmem:[%s1060_s4] sm:$0xff]  ;;  %v917_v45 = vmov 0   ;;  %v640_v46 = vld [vmem:[%s1060_s4 + $0x18] sm:$0xff]  ;;  %v633_v51 = vunpack.c.l.bf16 %v869_v41  ;;  %v634_v52 = vunpack.c.h.bf16 %v869_v41  ;;  %v635_v53 = vunpack.c.l.bf16 %v871_v21 }
 0x372   : > { %873 = vset.pattern.permute.xlu1 %v917_v45  ;;  %872 = vset.pattern.permute.xlu0 %v917_v45  ;;  %v638_v47 = vld [vmem:[%s1060_s4 + $0x8] sm:$0xff]  ;;  %v674_v48 = vld [vmem:[#allocation3] sm:$0x1]  ;;  %v636_v56 = vunpack.c.h.bf16 %v871_v21  ;;  %v680_v0 = vlaneseq }
 0x373   : > { %653 = vperm.xlu1 %873, %v639_v17   ;;  %643 = vperm.xlu0 %872, %v637_v19  }
 0x374   : > { %v681_v2 = vshrl.u32 %v680_v0, 7 }
 0x376   : > { %v682_v5 = vsub.s32 0, %v681_v2 }
 0x377   : > { %658 = vperm.xlu1 %873, %v640_v46   ;;  %648 = vperm.xlu0 %872, %v638_v47  }
 0x37b   : > { %677 = vperm.xlu0 %872, %v674_v48  }
 0x3ee   : > { %v654_v49 = vpop.permute.xlu1 %653  ;;  %v644_v50 = vpop.permute.xlu0 %643 }
 0x3ef   : > { %v661_v55 = vmul.f32 %v644_v50, %v633_v51  ;;  %v663_v59 = vmul.f32 %v654_v49, %v635_v53 }
 0x3f2   : > { %v649_v54 = vpop.permute.xlu0 %648  ;;  %v659_v58 = vpop.permute.xlu1 %658 }
 0x3f3   : > { %v662_v57 = vmul.f32 %v649_v54, %v634_v52  ;;  %v664_v61 = vmul.f32 %v659_v58, %v636_v56 }
 0x3f5   : > { %v665_v60 = vadd.f32 %v662_v57, %v661_v55 }
 0x3f6   : > { %v678_v7 = vpop.permute.xlu0 %677 }
 0x3f7   : > { %v666_v62 = vadd.f32 %v665_v60, %v663_v59  ;;  %v683_v10 = vrot.slane %v678_v7, %v682_v5 }
 0x3f9   : > { %v667_v63 = vadd.f32 %v666_v62, %v664_v61 }
 0x3fb   : > { %v668_v1 = vrot.slane %v667_v63, 4 }
 0x3fd   : > { %v669_v3 = vadd.f32 %v668_v1, %v667_v63 }
 0x3ff   : > { %v670_v4 = vrot.slane %v669_v3, 2 }
 0x401   : > { %v671_v6 = vadd.f32 %v670_v4, %v669_v3 }
 0x403   : > { %v672_v8 = vrot.slane %v671_v6, 1 }
 0x405   : > { %v673_v9 = vadd.f32 %v672_v8, %v671_v6 }
 0x407   : > { %v684_v11 = vadd.f32 %v683_v10, %v673_v9 }
 0x409   : > { %v779_v12 = vmul.f32 -1.442695, %v684_v11 }
 0x40b   : > { %874 = vpow2.f32 %v779_v12 }
 0x418   : > { %v875_v13 = vpop.eup %874 }
 0x419   : > { %v688_v14 = vadd.f32 1.0, %v875_v13 }
 0x41b   : > { %876 = vrcp.f32 %v688_v14 }
 0x428   : > { %v877_v15 = vpop.eup %876 }
 0x429   : > { %691 = vst [vmem:[#allocation4] sm:$0x1] %v877_v15 }
 0x42a PF: > { %p837_p6 = scmp.eq.s32.totalorder %s963_s24, 1  ;;  %s918_s7 = smov [#allocation4]  }
 0x42b   : > { %s699_s8 = sshll.u32 %s918_s7, 4  ;;  %s700_s8 = int_to_ptr.vmem [resolvable:$true] %s699_s8 }
 0x42c   : > { %s878_s9 = scalar_lea.vmem %s700_s8, 16  ;;  %s884_s10 = scalar_lea.vmem %s700_s8, 32 }
 0x42d   : > { %p879_p7 = scmp.ne.s32.totalorder %s700_s8, %s878_s9  ;;  %p885_p10 = scmp.lt.s32.totalorder %s700_s8, %s700_s8 }
 0x42e   : > { %p886_p11 = scmp.lt.s32.totalorder %s884_s10, %s878_s9 }
 0x42f   : > { %p880_p8 = pnand %p879_p7, %p837_p6 }
 0x430   : > { %p887_p12 = por %p886_p11, %p885_p10 }
 0x431   : > { %p881_p9 = pneg %p880_p8 }
 0x433   : > { %p888_p13 = pnand %p887_p12, %p881_p9 }
 0x435   : > { %891 = shalt.err (!%p888_p13)
}
 0x436   : > { %834 = dma.vmem_to_hbm [thread:$0]  (%p837_p6), %s700_s8, 16, %s1062_s6, [#allocation5]  }
 0x437   : > { %907 = dma.done.wait (%p837_p6), [#allocation5], 16  }
 0x438   : > { %909 = vsyncadd (%p837_p6), [#allocation5], 4294967280 }
 0x439 PF: > { %s19_s23 = sadd.s32 1, %s912_s23  }
 0x43a   : > { %p16_p0 = scmp.ge.s32.totalorder %s19_s23, 4  }
 0x43c   :  { %18 = sbr.rel (!%p16_p0) target bundleno = 4 (0x4), region = 82 }
 0x441   :  { %712 = vsyncpa [#allocation5], 1 }
 0x442   :  { %714 = vsyncpa [#allocation5 + $0x1], 1 }

</bundles_post_ra>
